<compile_context>
chip_gen: v5e
topology: v5e:2x2
jax: 0.10.0
libtpu: 0.0.40
codegen_flags: <defaults>
</compile_context>

<pallas_src>
import jax
import jax.numpy as jnp
from jax import lax
from jax.experimental import pallas as pl
from jax.experimental.pallas import tpu as pltpu

_LANE = 128
_SUBLANE = 16  # bf16 sublane packing (also valid for f32, which only needs 8)


def _round_up(x, m):
    return (x + m - 1) // m * m


def _vmem_capacity_bytes():
    try:
        return int(pltpu.get_tpu_info().vmem_capacity_bytes)
    except Exception:
        return 64 * 1024 * 1024  # conservative fallback (v7x per-TensorCore VMEM)


def _toy_model_kernel(x_ref, wt_ref, w_ref, o_ref):
    """x:(TB,Dp)  wt:(Dp,Hp)  w:(Hp,Dp)  ->  o:(TB,Dp)."""
    x = x_ref[...]
    # encode: (TB,Dp) @ (Dp,Hp) -> f32 (TB,Hp); MXU-native, no transpose.
    h = jnp.dot(x, wt_ref[...], preferred_element_type=jnp.float32)
    # relu in f32 (cast commutes with max(.,0), so this is exact either way).
    h = jnp.maximum(h, 0.0)
    # decode: (TB,Hp) @ (Hp,Dp) -> f32 (TB,Dp).
    o = jnp.dot(h.astype(w_ref.dtype), w_ref[...],
                preferred_element_type=jnp.float32)
    o_ref[...] = o.astype(o_ref.dtype)


def _pad_cast_2d(a, rows, cols, dtype):
    """Zero-pad `a` to (rows, cols) and cast; no-op if already aligned."""
    r, c = a.shape
    if r == rows and c == cols and a.dtype == jnp.dtype(dtype):
        return a
    return jnp.zeros((rows, cols), dtype).at[:r, :c].set(a.astype(dtype))


def _prepare_weights(W, compute_dtype):
    """Pad/cast W and W.T once (weights are static across forward calls)."""
    H, D = W.shape
    Dp = _round_up(max(D, 1), _LANE)
    Hp = _round_up(max(H, 1), _LANE)
    wp = _pad_cast_2d(W, Hp, Dp, compute_dtype)       # (Hp, Dp)  decode RHS
    wtp = _pad_cast_2d(W.T, Dp, Hp, compute_dtype)    # (Dp, Hp)  encode RHS
    return wp, wtp, H, D, Hp, Dp


def _choose_batch_tiling(B, Dp, Hp, comp_isize, out_isize, max_batch_tile):
    """Balanced batch tiles that fit VMEM; >=2 tiles when batch allows (v7x)."""
    Bp = _round_up(max(B, 1), _SUBLANE)
    vmem_budget = int(_vmem_capacity_bytes() * 0.6)  # headroom for scratch/regalloc
    # Footprint: double-buffered x and out tiles, W & Wt (2 bufs each), f32 h.
    w_bytes = 2 * 2 * Hp * Dp * comp_isize
    per_row = 2 * Dp * comp_isize + 2 * Dp * out_isize + Hp * 4
    tb_cap = max(_SUBLANE, (vmem_budget - w_bytes) // max(per_row, 1))
    tb_cap = min(tb_cap, max_batch_tile)
    tb_cap = max(_SUBLANE, (tb_cap // _SUBLANE) * _SUBLANE)

    num_tiles = pl.cdiv(Bp, tb_cap)
    if Bp >= 2 * _SUBLANE:            # >=2 grid steps so v7x uses both TCs
        num_tiles = max(num_tiles, 2)
    TB = _round_up(pl.cdiv(Bp, num_tiles), _SUBLANE)
    num_tiles = pl.cdiv(Bp, TB)
    Bp = num_tiles * TB
    return Bp, TB, num_tiles


def _forward_prepared(x, wp, wtp, H, D, Hp, Dp, *, compute_dtype, out_dtype,
                      max_batch_tile):
    if x.ndim == 1:                   # mirrors torch unsqueeze(0) in encode()
        x = x[None, :]
    B = x.shape[0]
    assert x.shape[1] == D, "input_dim mismatch"

    comp_isize = jnp.dtype(compute_dtype).itemsize
    out_isize = jnp.dtype(out_dtype).itemsize
    Bp, TB, num_tiles = _choose_batch_tiling(B, Dp, Hp, comp_isize, out_isize,
                                             max_batch_tile)
    xp = _pad_cast_2d(x, Bp, Dp, compute_dtype)

    flops = 2 * 2 * Bp * Hp * Dp      # two matmuls
    bytes_accessed = (xp.size * comp_isize
                      + (wp.size + wtp.size) * comp_isize
                      + Bp * Dp * out_isize)

    out_p = pl.pallas_call(
        _toy_model_kernel,
        out_shape=jax.ShapeDtypeStruct((Bp, Dp), out_dtype),
        grid=(num_tiles,),
        in_specs=[
            pl.BlockSpec((TB, Dp), lambda i: (i, 0)),   # batch tile of x
            pl.BlockSpec((Dp, Hp), lambda i: (0, 0)),   # W.T (encode RHS), resident
            pl.BlockSpec((Hp, Dp), lambda i: (0, 0)),   # W   (decode RHS), resident
        ],
        out_specs=pl.BlockSpec((TB, Dp), lambda i: (i, 0)),
        compiler_params=pltpu.CompilerParams(
            dimension_semantics=("parallel",),          # shard batch tiles on v7x
            vmem_limit_bytes=int(_vmem_capacity_bytes() * 0.75),
        ),
        cost_estimate=pl.CostEstimate(
            flops=flops, transcendentals=0, bytes_accessed=bytes_accessed),
    )(xp, wtp, wp)

    return out_p[:B, :D]


def toy_model_forward(x, W, *, compute_dtype=jnp.bfloat16,
                      out_dtype=jnp.float32, max_batch_tile=512):
    """relu(x @ W.T) @ W, matching ToyModel.forward.

    Note: compute_dtype=bf16 is a deliberate MXU-friendly precision downgrade
    vs the f32 PyTorch model; pass compute_dtype=jnp.float32 for parity.
    """
    wp, wtp, H, D, Hp, Dp = _prepare_weights(jnp.asarray(W), compute_dtype)
    return _forward_prepared(x, wp, wtp, H, D, Hp, Dp,
                             compute_dtype=compute_dtype, out_dtype=out_dtype,
                             max_batch_tile=max_batch_tile)


class ToyModelPallas:
    """Mirror of the PyTorch ToyModel; caches padded/casted weights."""

    def __init__(self, W, *, compute_dtype=jnp.bfloat16,
                 out_dtype=jnp.float32, max_batch_tile=512):
        self.compute_dtype = compute_dtype
        self.out_dtype = out_dtype
        self.max_batch_tile = max_batch_tile
        (self._wp, self._wtp, self.hidden_dim, self.input_dim,
         self._Hp, self._Dp) = _prepare_weights(jnp.asarray(W), compute_dtype)

    def __call__(self, x):
        return _forward_prepared(x, self._wp, self._wtp,
                                 self.hidden_dim, self.input_dim,
                                 self._Hp, self._Dp,
                                 compute_dtype=self.compute_dtype,
                                 out_dtype=self.out_dtype,
                                 max_batch_tile=self.max_batch_tile)


if __name__ == "__main__":
    input_dim = 10
    hidden_dim = 2
    batch = 4

    key = jax.random.PRNGKey(0)
    k_w, k_x = jax.random.split(key)

    # torch.rand -> uniform [0, 1); deterministic in-script init.
    W = jax.random.uniform(k_w, (hidden_dim, input_dim), dtype=jnp.float32)
    x = jax.random.normal(k_x, (batch, input_dim), dtype=jnp.float32)

    model = ToyModelPallas(W)           # cached padded weights
    out = model(x)
    out = jax.block_until_ready(out)

    # Reference 1: identical arithmetic (bf16 operands, f32 accumulation).
    xb = x.astype(jnp.bfloat16)
    wb = W.astype(jnp.bfloat16)
    h_ref = jnp.maximum(
        lax.dot_general(xb, wb, (((1,), (1,)), ((), ())),
                        preferred_element_type=jnp.float32), 0.0)
    ref_bf16 = lax.dot_general(h_ref.astype(jnp.bfloat16), wb,
                               (((1,), (0,)), ((), ())),
                               preferred_element_type=jnp.float32)
    # Reference 2: full-f32 PyTorch-equivalent math (loose tol due to bf16 operands).
    ref_f32 = jnp.maximum(x @ W.T, 0.0) @ W

    assert out.shape == (batch, input_dim)
    assert jnp.allclose(out, ref_bf16, atol=1e-4, rtol=1e-4), \
        "mismatch vs matched-precision reference"
    assert jnp.allclose(out, ref_f32, atol=1e-1, rtol=1e-1), \
        "mismatch vs f32 reference"

    # Also check the functional wrapper and the 1-D (unsqueeze) path.
    out_fn = jax.block_until_ready(toy_model_forward(x, W))
    assert jnp.allclose(out_fn, out, atol=1e-6, rtol=1e-6)
    out_1d = jax.block_until_ready(toy_model_forward(x[0], W))
    assert out_1d.shape == (1, input_dim)
    assert jnp.allclose(out_1d[0], out[0], atol=1e-6, rtol=1e-6)

    print("KERNEL_OK")
</pallas_src>

<mosaic_0001>
module attributes {stable_mosaic.version = 11 : i64} {
  func.func @_toy_model_kernel(%arg0: i32, %arg1: memref<16x128xbf16, #tpu.memory_space<vmem>>, %arg2: memref<128x128xbf16, #tpu.memory_space<vmem>>, %arg3: memref<128x128xbf16, #tpu.memory_space<vmem>>, %arg4: memref<16x128xf32, #tpu.memory_space<vmem>>) attributes {dimension_semantics = [#tpu.dimension_semantics<parallel>], iteration_bounds = array<i64: 1>, scalar_prefetch = 0 : i64, scratch_operands = 0 : i64, tpu.core_type = #tpu.core_type<tc>, window_params = [{transform_indices = @transform_0, window_bounds = array<i64: 16, 128>}, {pipeline_mode = #tpu.pipeline_mode<synchronous>, transform_indices = @transform_1, window_bounds = array<i64: 128, 128>}, {pipeline_mode = #tpu.pipeline_mode<synchronous>, transform_indices = @transform_2, window_bounds = array<i64: 128, 128>}, {transform_indices = @transform_3, window_bounds = array<i64: 16, 128>}]} {
    %c0 = arith.constant 0 : index
    %c0_0 = arith.constant 0 : index
    %0 = vector.load %arg1[%c0, %c0_0] : memref<16x128xbf16, #tpu.memory_space<vmem>>, vector<16x128xbf16>
    %c0_1 = arith.constant 0 : index
    %c0_2 = arith.constant 0 : index
    %1 = vector.load %arg2[%c0_1, %c0_2] : memref<128x128xbf16, #tpu.memory_space<vmem>>, vector<128x128xbf16>
    %cst = arith.constant dense<0.000000e+00> : vector<16x128xf32>
    %2 = tpu.matmul %0, %1, %cst {dimension_numbers = #tpu.dot_dimension_numbers<[1], [0], [0], [1], [0, 0, 1, 1], [], []>} : vector<16x128xbf16>, vector<128x128xbf16>, vector<16x128xf32> -> vector<16x128xf32>
    %cst_3 = arith.constant 0.000000e+00 : f32
    %3 = vector.broadcast %cst_3 : f32 to vector<16x128xf32>
    %4 = arith.maximumf %2, %3 : vector<16x128xf32>
    %5 = arith.truncf %4 : vector<16x128xf32> to vector<16x128xbf16>
    %c0_4 = arith.constant 0 : index
    %c0_5 = arith.constant 0 : index
    %6 = vector.load %arg3[%c0_4, %c0_5] : memref<128x128xbf16, #tpu.memory_space<vmem>>, vector<128x128xbf16>
    %cst_6 = arith.constant dense<0.000000e+00> : vector<16x128xf32>
    %7 = tpu.matmul %5, %6, %cst_6 {dimension_numbers = #tpu.dot_dimension_numbers<[1], [0], [0], [1], [0, 0, 1, 1], [], []>} : vector<16x128xbf16>, vector<128x128xbf16>, vector<16x128xf32> -> vector<16x128xf32>
    %c0_7 = arith.constant 0 : index
    %c0_8 = arith.constant 0 : index
    %8 = vector.load %arg4[%c0_7, %c0_8] : memref<16x128xf32, #tpu.memory_space<vmem>>, vector<16x128xf32>
    tpu.vector_store %arg4[%c0_7, %c0_8], %7 {strides = array<i32>} : memref<16x128xf32, #tpu.memory_space<vmem>>, vector<16x128xf32>,
    return
  }
  func.func @transform_0(%arg0: i32) -> (i32, i32) {
    %c0_i32 = arith.constant 0 : i32
    %c0_i32_0 = arith.constant 0 : i32
    return %arg0, %c0_i32 : i32, i32
  }
  func.func @transform_1(%arg0: i32) -> (i32, i32) {
    %c0_i32 = arith.constant 0 : i32
    %c0_i32_0 = arith.constant 0 : i32
    %c0_i32_1 = arith.constant 0 : i32
    return %c0_i32, %c0_i32_0 : i32, i32
  }
  func.func @transform_2(%arg0: i32) -> (i32, i32) {
    %c0_i32 = arith.constant 0 : i32
    %c0_i32_0 = arith.constant 0 : i32
    %c0_i32_1 = arith.constant 0 : i32
    return %c0_i32, %c0_i32_0 : i32, i32
  }
  func.func @transform_3(%arg0: i32) -> (i32, i32) {
    %c0_i32 = arith.constant 0 : i32
    %c0_i32_0 = arith.constant 0 : i32
    return %arg0, %c0_i32 : i32, i32
  }
}

</mosaic_0001>

<bundles_post_ra>
// kernel: tpu_custom_call.1
= control target key start
LH: loop header
LB: loop body
LE: loop exit
PB: predicated region body
PF: predicated region fallthrough
CT: control target
= control target key end

     0   :  { %8 = vsyncpa [#allocation3], 0  ;;  %s486_s0 = inlined_call_operand.hbm [shape: bf16[16,128], index: 0, kind: input, shape index: {}]   ;;  %s487_s1 = inlined_call_operand.hbm [shape: bf16[128,128], index: 1, kind: input, shape index: {}]   ;;  %s488_s2 = inlined_call_operand.hbm [shape: bf16[128,128], index: 2, kind: input, shape index: {}]   ;;  %s489_s3 = inlined_call_operand.hbm [shape: f32[16,128], index: 3, kind: output, shape index: {}]  }
   0x1   :  { %9 = vsyncpa [#allocation6], 0 }
   0x2   :  { %10 = vsyncpa [#allocation4], 0  ;;  %s28_s14 = sshll.u32 %s487_s1, 4  ;;  %s446_s15 = smov [#allocation5]   ;;  %s29_s14 = int_to_ptr.hbm [resolvable:$true] %s28_s14 }
   0x3   :  { %s30_s16 = sshll.u32 %s446_s15, 4  ;;  %s15_s19 = sshll.u32 %s486_s0, 4  ;;  %s31_s16 = int_to_ptr.vmem [resolvable:$true] %s30_s16  ;;  %s16_s19 = int_to_ptr.hbm [resolvable:$true] %s15_s19 }
   0x4   :  { %s447_s20 = smov 64   ;;  %s448_s21 = smov 4  }
   0x5   :  { %36 = dma.hbm_to_vmem [thread:$0]  %s29_s14, 1024, %s31_s16, [#allocation6], %s447_s20, %s447_s20, %s448_s21  }
   0x6   :  { %s449_s22 = smov [#allocation2]   ;;  %s41_s26 = sshll.u32 %s488_s2, 4  ;;  %s42_s26 = int_to_ptr.hbm [resolvable:$true] %s41_s26 }
   0x7   :  { %s17_s23 = sshll.u32 %s449_s22, 4  ;;  %s450_s1 = smov [#allocation7]   ;;  %s18_s23 = int_to_ptr.vmem [resolvable:$true] %s17_s23 }
   0x8   :  { %23 = dma.hbm_to_vmem [thread:$0]  %s16_s19, 128, %s18_s23, [#allocation3], %s447_s20, %s447_s20, %s448_s21  }
   0x9   :  { %s43_s27 = sshll.u32 %s450_s1, 4  ;;  %s44_s27 = int_to_ptr.vmem [resolvable:$true] %s43_s27 }
   0xa   :  { %49 = dma.hbm_to_vmem [thread:$0]  %s42_s26, 1024, %s44_s27, [#allocation6], %s447_s20, %s447_s20, %s448_s21  }
   0xb   :  { %440 = dma.done.wait [#allocation3], 128  }
   0xc   :  { %441 = vsyncadd [#allocation3], 4294967168 }
   0xd   :  { %442 = dma.done.wait [#allocation6], 2048  }
   0xe   :  { %443 = vsyncadd [#allocation6], 4294965248  ;;  %v327_v0 = vld [vmem:[#allocation5 + $0x38] sm:$0xff]  ;;  %v326_v1 = vld [vmem:[#allocation5 + $0x30] sm:$0xff]  ;;  %s451_s0 = smov [#allocation8]   ;;  %s237_s30 = sshll.u32 %s489_s3, 4  ;;  %s238_s30 = int_to_ptr.hbm [resolvable:$true] %s237_s30 }
   0xf   :  { %134 = vmatpush.bf16.msra.mxu0 %v327_v0  ;;  %v335_v2 = vld [vmem:[#allocation7 + $0x38] sm:$0xff]  ;;  %v334_v3 = vld [vmem:[#allocation7 + $0x30] sm:$0xff]  ;;  %v325_v4 = vld [vmem:[#allocation5 + $0x28] sm:$0xff]  ;;  %s235_s2 = sshll.u32 %s451_s0, 4  ;;  %s452_s4 = smov 128   ;;  %s236_s2 = int_to_ptr.vmem [resolvable:$true] %s235_s2 }
  0x10   :  { %215 = vmatpush.bf16.msra.mxu1 %v335_v2  ;;  %v333_v5 = vld [vmem:[#allocation7 + $0x28] sm:$0xff]  ;;  %v324_v6 = vld [vmem:[#allocation5 + $0x20] sm:$0xff]  ;;  %v323_v8 = vld [vmem:[#allocation5 + $0x18] sm:$0xff]  ;;  %s453_s5 = smov 8  }
  0x11   :  { %v332_v7 = vld [vmem:[#allocation7 + $0x20] sm:$0xff]  ;;  %v331_v9 = vld [vmem:[#allocation7 + $0x18] sm:$0xff]  ;;  %v322_v10 = vld [vmem:[#allocation5 + $0x10] sm:$0xff] }
  0x12   :  { %v321_v11 = vld [vmem:[#allocation5 + $0x8] sm:$0xff]  ;;  %v320_v12 = vld [vmem:[#allocation5] sm:$0xff]  ;;  %v319_v13 = vld [vmem:[#allocation2] sm:$0xff] }
  0x13   :  { %135 = vmatpush.bf16.msra.mxu0 %v326_v1  ;;  %v330_v14 = vld [vmem:[#allocation7 + $0x10] sm:$0xff]  ;;  %v329_v15 = vld [vmem:[#allocation7 + $0x8] sm:$0xff]  ;;  %v328_v16 = vld [vmem:[#allocation7] sm:$0xff] }
  0x14   :  { %216 = vmatpush.bf16.msra.mxu1 %v334_v3 }
  0x17   :  { %136 = vmatpush.bf16.msra.mxu0 %v325_v4 }
  0x18   :  { %217 = vmatpush.bf16.msra.mxu1 %v333_v5 }
  0x1b   :  { %137 = vmatpush.bf16.msra.mxu0 %v324_v6 }
  0x1c   :  { %218 = vmatpush.bf16.msra.mxu1 %v332_v7 }
  0x1f   :  { %138 = vmatpush.bf16.msra.mxu0 %v323_v8 }
  0x20   :  { %219 = vmatpush.bf16.msra.mxu1 %v331_v9 }
  0x23   :  { %139 = vmatpush.bf16.msra.mxu0 %v322_v10 }
  0x24   :  { %220 = vmatpush.bf16.msra.mxu1 %v330_v14 }
  0x27   :  { %140 = vmatpush.bf16.msra.mxu0 %v321_v11 }
  0x28   :  { %221 = vmatpush.bf16.msra.mxu1 %v329_v15 }
  0x2b   :  { %141 = vmatpush.bf16.msra.mxu0 %v320_v12 }
  0x2c   :  { %222 = vmatpush.bf16.msra.mxu1 %v328_v16 }
  0x2e   :  { %142 = vmatmul.bf16.vlgmr.msra.gmra.mxu0 %v319_v13 }
  0xab   :  { %v143_v17 = vpop.f32.mrf.mxu0 }
  0xac   :  { %v148_v19 = vmax.f32 %v143_v17, 0.0 }
  0xb3   :  { %v145_v18 = vpop.f32.mrf.mxu0 }
  0xb4   :  { %v149_v20 = vmax.f32 %v145_v18, 0.0 }
  0xb6   :  { %v150_v21 = vpack.c.bf16 %v149_v20, %v148_v19 }
  0xb8   :  { %223 = vmatmul.bf16.vlgmr.msra.gmra.mxu1 %v150_v21 }
 0x135   :  { %v224_v22 = vpop.f32.mrf.mxu1 }
 0x136   :  { %229 = vst [vmem:[#allocation8] sm:$0xff] %v224_v22 }
 0x13d   :  { %v226_v23 = vpop.f32.mrf.mxu1 }
 0x13e   :  { %230 = vst [vmem:[#allocation8 + $0x8] sm:$0xff] %v226_v23 }
 0x13f   :  { %243 = dma.vmem_to_hbm [thread:$0]  %s236_s2, 256, %s238_s30, [#allocation4], %s452_s4, %s452_s4, %s453_s5  }
 0x140   :  { %444 = dma.done.wait [#allocation4], 256  }
 0x141   :  { %445 = vsyncadd [#allocation4], 4294967040 }
 0x142   :  { %248 = vsyncpa [#allocation3], 1 }
 0x143   :  { %249 = vsyncpa [#allocation6], 1 }
 0x144   :  { %250 = vsyncpa [#allocation4], 1 }

</bundles_post_ra>
